<compile_context>
chip_gen: v7x
topology: tpu7x:2x2x1
jax: 0.10.0
libtpu: 0.0.40
codegen_flags: <defaults>
</compile_context>

<pallas_src>
import functools
import math

import jax
import jax.numpy as jnp
from jax import lax
from jax.experimental import pallas as pl
from jax.experimental.pallas import tpu as pltpu


def _round_up(x, m):
    return ((x + m - 1) // m) * m


def _erf(x):
    # Abramowitz & Stegun 7.1.26 (max abs err ~1.5e-7); reciprocal on the EUP.
    a1, a2, a3, a4, a5 = 0.254829592, -0.284496736, 1.421413741, -1.453152027, 1.061405429
    p = 0.3275911
    sgn = jnp.where(x >= 0.0, 1.0, -1.0)
    ax = jnp.abs(x)
    t = pl.reciprocal(1.0 + p * ax, approx=True)
    poly = ((((a5 * t + a4) * t + a3) * t + a2) * t + a1) * t
    return sgn * (1.0 - poly * jnp.exp(-ax * ax))


def _event_kernel(times_ref, st_ref, z0_ref, v0_ref, g_ref, params_ref, out_ref,
                  *, n_nodes):
    """Mean over node pairs of (beta - ||z_i(t)-z_j(t)||^2) for one block of times.

    times_ref : (1, TU)   f32  event times (lane-dense)
    st_ref    : (S, 1)    f32  step start times
    z0_ref    : (D*N, 1)  f32  coord-major flattened initial positions
    v0_ref    : (D*N, S)  f32  coord-major flattened per-step velocities
    g_ref     : (D, D*N)  f32  coordinate-group indicator (1 where row // N == d)
    params_ref: (2,) f32 SMEM  [beta, step_size]
    out_ref   : (1, TU)   f32
    """
    beta = params_ref[0]
    dt = params_ref[1]

    t = times_ref[...]                                   # (1, TU)
    st = st_ref[...]                                     # (S, 1)

    # Exact replacement of the reference mask/cumsum logic for linspace steps:
    # time spent inside step s by time t is clip(t - start_s, 0, dt).
    deltas = jnp.clip(t - st, 0.0, dt)                   # (S, TU)

    # Single fused MXU matmul over all coordinates: zt[d*N + n, u] = z0 + v0 @ deltas
    zt = jnp.dot(v0_ref[...], deltas, preferred_element_type=jnp.float32)
    zt = zt + z0_ref[...]                                # (D*N, TU)

    # sum_{i<j} ||z_i - z_j||^2 = N * sum_{d,i} z^2 - sum_d (sum_i z_{d,i})^2
    sumsq = jnp.sum(zt * zt, axis=0, keepdims=True)      # (1, TU)
    colsum = jnp.dot(g_ref[...], zt, preferred_element_type=jnp.float32)   # (D, TU)
    sq_of_sum = jnp.sum(colsum * colsum, axis=0, keepdims=True)            # (1, TU)
    pair_sum = n_nodes * sumsq - sq_of_sum               # (1, TU)

    n_pairs = float(n_nodes * (n_nodes - 1) // 2)
    out_ref[...] = beta - pair_sum * (1.0 / n_pairs)


def _integral_kernel(bi_ref, bj_ref, zi_ref, zj_ref, vi_ref, vj_ref, st_ref,
                     params_ref, out_ref, *, n_real):
    """Partial non-event integral for one (bi, bj) upper-triangular node block.

    bi_ref/bj_ref : (T,) i32 SMEM   node-block indices (scalar prefetch)
    zi_ref/zj_ref : (D, TN, S) f32  step-start positions for block bi / bj
    vi_ref/vj_ref : (D, TN, S) f32  per-step velocities for block bi / bj
    st_ref        : (1, S) f32      step start times
    params_ref    : (4,) f32 SMEM   [beta, step_size, t0, tn]
    out_ref       : (1, 1, 128) f32 block partial sum broadcast over lanes
    """
    p = pl.program_id(0)
    bi = bi_ref[p]
    bj = bj_ref[p]

    beta = params_ref[0]
    dt = params_ref[1]
    t0 = params_ref[2]
    tn = params_ref[3]

    D = zi_ref.shape[0]
    TN = zi_ref.shape[1]
    S = zi_ref.shape[2]

    st = st_ref[...]                                     # (1, S)
    lo = jnp.clip(t0 - st, 0.0, dt)[None]                # (1, 1, S)
    hi = jnp.clip(tn - st, 0.0, dt)[None]                # (1, 1, S)

    a = jnp.zeros((TN, TN, S), jnp.float32)              # ||dv||^2
    b = jnp.zeros((TN, TN, S), jnp.float32)              # dz . dv
    c = jnp.zeros((TN, TN, S), jnp.float32)              # ||dz||^2
    for d in range(D):
        zi = zi_ref[d]                                   # (TN, S)
        zj = zj_ref[d]
        vi = vi_ref[d]
        vj = vj_ref[d]
        dz = zi[:, None, :] - zj[None, :, :]             # (TN, TN, S)
        dv = vi[:, None, :] - vj[None, :, :]
        a = a + dv * dv
        b = b + dz * dv
        c = c + dz * dz

    # Closed-form: int_lo^hi exp(beta - (a tau^2 + 2 b tau + c)) dtau
    eps = 1e-12
    a_safe = jnp.maximum(a, eps)
    inv_sa = lax.rsqrt(a_safe)                           # 1/sqrt(a)
    sa = a_safe * inv_sa                                 # sqrt(a)
    shift = b * inv_sa                                   # b/sqrt(a)  (shift^2 = b^2/a <= c, so exp stays finite)
    pref = (0.5 * math.sqrt(math.pi)) * inv_sa
    quad = jnp.exp(beta - c + shift * shift) * pref * (
        _erf(sa * hi + shift) - _erf(sa * lo + shift))
    lin = jnp.exp(beta - c) * (hi - lo)                  # dv == 0 branch
    integ = jnp.where(a > 1e-10, quad, lin)              # (TN, TN, S)

    per_pair = jnp.sum(integ, axis=2)                    # (TN, TN)

    # strict-upper-triangle + node-padding mask, applied only on the small
    # reduced (TN, TN) tile (negligible vs the (TN, TN, S) elementwise path).
    gi = bi * TN + lax.broadcasted_iota(jnp.int32, (TN, TN), 0)
    gj = bj * TN + lax.broadcasted_iota(jnp.int32, (TN, TN), 1)
    valid = jnp.logical_and(gi < gj,
                            jnp.logical_and(gi < n_real, gj < n_real))
    block_sum = jnp.sum(jnp.where(valid, per_pair, 0.0))
    out_ref[...] = jnp.broadcast_to(block_sum, (1, 1, 128)).astype(jnp.float32)


def baseline_mean_intensity_forward(data, t0, tn, z0, v0, beta, steps, max_time):
    """Negative log-likelihood of the baseline constant-velocity model.

    data : (E, 3) f32  columns [node_i, node_j, time]  (only the time column used)
    z0   : (N, D) f32  initial latent positions
    v0   : (N, D, S) f32 per-step velocities
    """
    z0 = jnp.asarray(z0, jnp.float32)
    v0 = jnp.asarray(v0, jnp.float32)
    N, D = z0.shape
    S = int(steps)

    time_intervals = jnp.linspace(0.0, max_time, S + 1).astype(jnp.float32)
    start_times = time_intervals[:-1]
    end_times = time_intervals[1:]
    time_deltas = end_times - start_times
    step_size = time_deltas[0]

    # --- event term --------------------------------------------------------
    times = data[:, 2].astype(jnp.float32)
    E = int(times.shape[0])
    TU = 512                                             # times per grid step
    U_pad = _round_up(max(E, 1), TU)
    times_pad = jnp.pad(times, (0, U_pad - E)).reshape(1, U_pad)

    z0_flat = jnp.transpose(z0, (1, 0)).reshape(D * N, 1)          # (D*N, 1)
    v0_flat = jnp.transpose(v0, (1, 0, 2)).reshape(D * N, S)       # (D*N, S)
    g_mat = jnp.repeat(jnp.eye(D, dtype=jnp.float32), N, axis=1)   # (D, D*N)
    ev_params = jnp.stack(
        [jnp.asarray(beta, jnp.float32), step_size]).astype(jnp.float32)

    log_int = pl.pallas_call(
        functools.partial(_event_kernel, n_nodes=N),
        out_shape=jax.ShapeDtypeStruct((1, U_pad), jnp.float32),
        grid=(U_pad // TU,),
        in_specs=[
            pl.BlockSpec((1, TU), lambda u: (0, u)),               # event times
            pl.BlockSpec((S, 1), lambda u: (0, 0)),                # step starts
            pl.BlockSpec((D * N, 1), lambda u: (0, 0)),            # z0
            pl.BlockSpec((D * N, S), lambda u: (0, 0)),            # v0
            pl.BlockSpec((D, D * N), lambda u: (0, 0)),            # group matrix
            pl.BlockSpec(memory_space=pltpu.MemorySpace.SMEM),     # [beta, dt]
        ],
        out_specs=pl.BlockSpec((1, TU), lambda u: (0, u)),
        compiler_params=pltpu.CompilerParams(
            dimension_semantics=("parallel",)),
    )(times_pad, start_times[:, None], z0_flat, v0_flat, g_mat, ev_params)

    # Sum over all events == reference's unique-times dedup + inverse-index sum.
    event_intensity = jnp.sum(log_int[0, :E])

    # --- non-event (integral) term ------------------------------------------
    # steps_z0: latent position at the start of every step (plain-JAX glue).
    cum = jnp.cumsum(v0 * time_deltas[None, None, :], axis=2)                # (N, D, S)
    zsteps = jnp.concatenate([z0[:, :, None], z0[:, :, None] + cum], axis=2)[:, :, :-1]

    # Node tile: multiple of 8, capped so ~8 live (TN, TN, S) f32 temporaries
    # stay under ~10 MiB (fits the scoped-VMEM defaults on v5e/v6e/v7x).
    budget = 10 * 1024 * 1024
    tn_cap = int(math.sqrt(budget / (8.0 * 4.0 * S)))
    TN = max(8, min(128, (tn_cap // 8) * 8, _round_up(N, 8)))
    NB = _round_up(N, TN) // TN
    N_pad = NB * TN

    zs_dns = jnp.transpose(zsteps, (1, 0, 2))                                # (D, N, S)
    v_dns = jnp.transpose(v0, (1, 0, 2))
    if N_pad != N:
        pad = ((0, 0), (0, N_pad - N), (0, 0))
        zs_dns = jnp.pad(zs_dns, pad)
        v_dns = jnp.pad(v_dns, pad)

    # Visit only upper-triangular node-block pairs (bj >= bi): ~2x less work.
    blk_i = [i for i in range(NB) for j in range(i, NB)]
    blk_j = [j for i in range(NB) for j in range(i, NB)]
    T = len(blk_i)
    bi_arr = jnp.asarray(blk_i, jnp.int32)
    bj_arr = jnp.asarray(blk_j, jnp.int32)

    int_params = jnp.stack(
        [jnp.asarray(beta, jnp.float32), step_size,
         jnp.asarray(t0, jnp.float32), jnp.asarray(tn, jnp.float32)]
    ).astype(jnp.float32)

    partials = pl.pallas_call(
        functools.partial(_integral_kernel, n_real=N),
        out_shape=jax.ShapeDtypeStruct((T, 1, 128), jnp.float32),
        grid_spec=pltpu.PrefetchScalarGridSpec(
            num_scalar_prefetch=2,
            grid=(T,),
            in_specs=[
                pl.BlockSpec((D, TN, S), lambda p, bi, bj: (0, bi[p], 0)),   # z block i
                pl.BlockSpec((D, TN, S), lambda p, bi, bj: (0, bj[p], 0)),   # z block j
                pl.BlockSpec((D, TN, S), lambda p, bi, bj: (0, bi[p], 0)),   # v block i
                pl.BlockSpec((D, TN, S), lambda p, bi, bj: (0, bj[p], 0)),   # v block j
                pl.BlockSpec((1, S), lambda p, bi, bj: (0, 0)),              # step starts
                pl.BlockSpec(memory_space=pltpu.MemorySpace.SMEM),           # params
            ],
            out_specs=pl.BlockSpec((1, 1, 128), lambda p, bi, bj: (p, 0, 0)),
        ),
        compiler_params=pltpu.CompilerParams(
            dimension_semantics=("parallel",),
            vmem_limit_bytes=32 * 1024 * 1024),
    )(bi_arr, bj_arr, zs_dns, zs_dns, v_dns, v_dns,
      start_times[None, :], int_params)

    non_event_intensity = jnp.sum(partials[:, 0, 0])

    log_likelihood = event_intensity - non_event_intensity
    return -log_likelihood


if __name__ == "__main__":
    key = jax.random.PRNGKey(0)
    k_z, k_v, k_t, k_n = jax.random.split(key, 4)

    N, D, S = 8, 2, 8           # nodes, latent dims, velocity steps
    max_time = 10.0
    beta = 1.5
    E = 16                      # number of interaction events

    z = jax.random.normal(k_z, (N, D), jnp.float32)
    v = 0.1 * jax.random.normal(k_v, (N, D, S), jnp.float32)

    event_times = jax.random.uniform(k_t, (E,), jnp.float32, 0.0, max_time)
    node_pairs = jax.random.randint(k_n, (E, 2), 0, N).astype(jnp.float32)
    data = jnp.concatenate([node_pairs, event_times[:, None]], axis=1)   # (E, 3)

    t0, tn = 0.0, max_time

    loss = baseline_mean_intensity_forward(data, t0, tn, z, v, beta, S, max_time)
    loss = jax.block_until_ready(loss)
    assert loss.shape == () and bool(jnp.isfinite(loss))
    print("KERNEL_OK")
</pallas_src>

<mosaic_0001>
module attributes {stable_mosaic.version = 11 : i64} {
  func.func @_event_kernel(%arg0: i32, %arg1: memref<1x512xf32, #tpu.memory_space<vmem>>, %arg2: memref<8x1xf32, #tpu.memory_space<vmem>>, %arg3: memref<16x1xf32, #tpu.memory_space<vmem>>, %arg4: memref<16x8xf32, #tpu.memory_space<vmem>>, %arg5: memref<2x16xf32, #tpu.memory_space<vmem>>, %arg6: memref<2xf32, #tpu.memory_space<smem>>, %arg7: memref<1x512xf32, #tpu.memory_space<vmem>>) attributes {dimension_semantics = [#tpu.dimension_semantics<parallel>], iteration_bounds = array<i64: 1>, scalar_prefetch = 0 : i64, scratch_operands = 0 : i64, tpu.core_type = #tpu.core_type<tc>, window_params = [{transform_indices = @transform_0, window_bounds = array<i64: 1, 512>}, {pipeline_mode = #tpu.pipeline_mode<synchronous>, transform_indices = @transform_1, window_bounds = array<i64: 8, 1>}, {pipeline_mode = #tpu.pipeline_mode<synchronous>, transform_indices = @transform_2, window_bounds = array<i64: 16, 1>}, {pipeline_mode = #tpu.pipeline_mode<synchronous>, transform_indices = @transform_3, window_bounds = array<i64: 16, 8>}, {pipeline_mode = #tpu.pipeline_mode<synchronous>, transform_indices = @transform_4, window_bounds = array<i64: 2, 16>}, {transform_indices = @transform_5, window_bounds = array<i64: 2>}, {transform_indices = @transform_6, window_bounds = array<i64: 1, 512>}]} {
    %c0 = arith.constant 0 : index
    %0 = memref.load %arg6[%c0] : memref<2xf32, #tpu.memory_space<smem>>
    %c1 = arith.constant 1 : index
    %1 = memref.load %arg6[%c1] : memref<2xf32, #tpu.memory_space<smem>>
    %c0_0 = arith.constant 0 : index
    %c0_1 = arith.constant 0 : index
    %2 = vector.load %arg1[%c0_0, %c0_1] : memref<1x512xf32, #tpu.memory_space<vmem>>, vector<1x512xf32>
    %c0_2 = arith.constant 0 : index
    %c0_3 = arith.constant 0 : index
    %3 = vector.load %arg2[%c0_2, %c0_3] : memref<8x1xf32, #tpu.memory_space<vmem>>, vector<8x1xf32>
    %4 = vector.broadcast %2 : vector<1x512xf32> to vector<8x512xf32>
    %5 = vector.broadcast %3 : vector<8x1xf32> to vector<8x512xf32>
    %6 = arith.subf %4, %5 : vector<8x512xf32>
    %cst = arith.constant 0.000000e+00 : f32
    %7 = vector.broadcast %cst : f32 to vector<8x512xf32>
    %8 = arith.maximumf %7, %6 : vector<8x512xf32>
    %9 = vector.broadcast %1 : f32 to vector<8x512xf32>
    %10 = arith.minimumf %9, %8 : vector<8x512xf32>
    %c0_4 = arith.constant 0 : index
    %c0_5 = arith.constant 0 : index
    %11 = vector.load %arg4[%c0_4, %c0_5] : memref<16x8xf32, #tpu.memory_space<vmem>>, vector<16x8xf32>
    %cst_6 = arith.constant dense<0.000000e+00> : vector<16x512xf32>
    %12 = tpu.matmul %11, %10, %cst_6 {dimension_numbers = #tpu.dot_dimension_numbers<[1], [0], [0], [1], [0, 0, 1, 1], [], []>} : vector<16x8xf32>, vector<8x512xf32>, vector<16x512xf32> -> vector<16x512xf32>
    %c0_7 = arith.constant 0 : index
    %c0_8 = arith.constant 0 : index
    %13 = vector.load %arg3[%c0_7, %c0_8] : memref<16x1xf32, #tpu.memory_space<vmem>>, vector<16x1xf32>
    %14 = vector.broadcast %13 : vector<16x1xf32> to vector<16x512xf32>
    %15 = arith.addf %12, %14 : vector<16x512xf32>
    %16 = arith.mulf %15, %15 : vector<16x512xf32>
    %cst_9 = arith.constant dense<0.000000e+00> : vector<512xf32>
    %17 = vector.multi_reduction <add>, %16, %cst_9 [0] : vector<16x512xf32> to vector<512xf32>
    %18 = vector.shape_cast %17 : vector<512xf32> to vector<1x512xf32>
    %c0_10 = arith.constant 0 : index
    %c0_11 = arith.constant 0 : index
    %19 = vector.load %arg5[%c0_10, %c0_11] : memref<2x16xf32, #tpu.memory_space<vmem>>, vector<2x16xf32>
    %cst_12 = arith.constant dense<0.000000e+00> : vector<2x512xf32>
    %20 = tpu.matmul %19, %15, %cst_12 {dimension_numbers = #tpu.dot_dimension_numbers<[1], [0], [0], [1], [0, 0, 1, 1], [], []>} : vector<2x16xf32>, vector<16x512xf32>, vector<2x512xf32> -> vector<2x512xf32>
    %21 = arith.mulf %20, %20 : vector<2x512xf32>
    %cst_13 = arith.constant dense<0.000000e+00> : vector<512xf32>
    %22 = vector.multi_reduction <add>, %21, %cst_13 [0] : vector<2x512xf32> to vector<512xf32>
    %23 = vector.shape_cast %22 : vector<512xf32> to vector<1x512xf32>
    %cst_14 = arith.constant 8.000000e+00 : f32
    %24 = vector.broadcast %cst_14 : f32 to vector<1x512xf32>
    %25 = arith.mulf %24, %18 : vector<1x512xf32>
    %26 = arith.subf %25, %23 : vector<1x512xf32>
    %cst_15 = arith.constant 0.0357142873 : f32
    %27 = vector.broadcast %cst_15 : f32 to vector<1x512xf32>
    %28 = arith.mulf %26, %27 : vector<1x512xf32>
    %29 = vector.broadcast %0 : f32 to vector<1x512xf32>
    %30 = arith.subf %29, %28 : vector<1x512xf32>
    %c0_16 = arith.constant 0 : index
    %c0_17 = arith.constant 0 : index
    %31 = vector.load %arg7[%c0_16, %c0_17] : memref<1x512xf32, #tpu.memory_space<vmem>>, vector<1x512xf32>
    tpu.vector_store %arg7[%c0_16, %c0_17], %30 {strides = array<i32>} : memref<1x512xf32, #tpu.memory_space<vmem>>, vector<1x512xf32>,
    return
  }
  func.func @transform_0(%arg0: i32) -> (i32, i32) {
    %c0_i32 = arith.constant 0 : i32
    %c0_i32_0 = arith.constant 0 : i32
    return %c0_i32, %arg0 : i32, i32
  }
  func.func @transform_1(%arg0: i32) -> (i32, i32) {
    %c0_i32 = arith.constant 0 : i32
    %c0_i32_0 = arith.constant 0 : i32
    %c0_i32_1 = arith.constant 0 : i32
    return %c0_i32, %c0_i32_0 : i32, i32
  }
  func.func @transform_2(%arg0: i32) -> (i32, i32) {
    %c0_i32 = arith.constant 0 : i32
    %c0_i32_0 = arith.constant 0 : i32
    %c0_i32_1 = arith.constant 0 : i32
    return %c0_i32, %c0_i32_0 : i32, i32
  }
  func.func @transform_3(%arg0: i32) -> (i32, i32) {
    %c0_i32 = arith.constant 0 : i32
    %c0_i32_0 = arith.constant 0 : i32
    %c0_i32_1 = arith.constant 0 : i32
    return %c0_i32, %c0_i32_0 : i32, i32
  }
  func.func @transform_4(%arg0: i32) -> (i32, i32) {
    %c0_i32 = arith.constant 0 : i32
    %c0_i32_0 = arith.constant 0 : i32
    %c0_i32_1 = arith.constant 0 : i32
    return %c0_i32, %c0_i32_0 : i32, i32
  }
  func.func @transform_5(%arg0: i32) -> i32 {
    %c0_i32 = arith.constant 0 : i32
    %c0_i32_0 = arith.constant 0 : i32
    return %c0_i32 : i32
  }
  func.func @transform_6(%arg0: i32) -> (i32, i32) {
    %c0_i32 = arith.constant 0 : i32
    %c0_i32_0 = arith.constant 0 : i32
    return %c0_i32, %arg0 : i32, i32
  }
}

</mosaic_0001>

<bundles_post_ra>
// kernel: tpu_custom_call.1
= control target key start
LH: loop header
LB: loop body
LE: loop exit
PB: predicated region body
PF: predicated region fallthrough
CT: control target
= control target key end

     0   :  { %11 = vsyncpa [#allocation4], 0  ;;  %s686_s0 = inlined_call_operand.vmem [shape: f32[1,512], index: 0, kind: input, shape index: {}]   ;;  %s687_s1 = inlined_call_operand.vmem [shape: f32[8,1], index: 1, kind: input, shape index: {}]   ;;  %s688_s2 = inlined_call_operand.vmem [shape: f32[16,1], index: 2, kind: input, shape index: {}]   ;;  %s689_s3 = inlined_call_operand.vmem [shape: f32[16,8], index: 3, kind: input, shape index: {}]   ;;  %s690_s4 = inlined_call_operand.vmem [shape: f32[2,16], index: 4, kind: input, shape index: {}]   ;;  %s691_s5 = inlined_call_operand.vmem [shape: f32[2], index: 5, kind: input, shape index: {}]   ;;  %s692_s6 = inlined_call_operand.hbm [shape: f32[1,512], index: 6, kind: output, shape index: {}]  }
   0x1   :  { %12 = vsyncpa [#allocation3], 0  ;;  %s29_s23 = sshll.u32 %s691_s5, 4  ;;  %s30_s23 = int_to_ptr.vmem [resolvable:$true] %s29_s23 }
   0x2   :  { %s559_s24 = scalar_lea.vmem %s30_s23, 16  ;;  %p564_p1 = scmp.lt.s32.totalorder %s30_s23, %s30_s23 }
   0x3   :  { %p560_p0 = scmp.ne.s32.totalorder %s30_s23, %s559_s24  ;;  %p565_p2 = scmp.lt.s32.totalorder %s559_s24, %s559_s24 }
   0x5   :  { %p566_p3 = por %p565_p2, %p564_p1 }
   0x7   :  { %p567_p4 = pnand %p566_p3, %p560_p0 }
   0x9   :  { %570 = shalt.err (!%p567_p4)
}
   0xa   :  { %s597_s25 = smov [#allocation2]  }
   0xb   :  { %32 = dma.vmem_to_smem %s30_s23, 16, %s597_s25, [#allocation4]  }
   0xc   :  { %593 = dma.done.wait [#allocation4], 16  }
   0xd   :  { %594 = vsyncadd [#allocation4], 4294967280 }
   0xe   :  { %36 = sfence }
   0xf   :  { %v40_v0 = vld [vmem:[%s687_s1] sm:$0xff]  ;;  %v598_v1 = vmov 0   ;;  %v599_v3 = vmov 0.0   ;;  %v83_v4 = vld [vmem:[%s688_s2 + $0x8] sm:$0xff]  ;;  %v42_v5 = vlaneseq  ;;  %s537_s1 = sld [smem:[#allocation2 + $0x1]]  ;;  %vm94_vm0 = vcmask 64512  }
  0x10   :  { %557 = vset.pattern.permute.xlu0 %v598_v1  ;;  %558 = vset.pattern.permute.xlu1 %v598_v1  ;;  %v82_v2 = vld [vmem:[%s688_s2] sm:$0xff]  ;;  %v81_v31 = vld [vmem:[%s689_s3 + $0x8] sm:$0xff]  ;;  %vm292_vm1 = vcmask 130048   ;;  %vm442_vm2 = vcmask 1041408   ;;  %s601_s12 = smov [#allocation5]  }
  0x11   :  { %64 = vperm.xlu0 %557, %v40_v0   ;;  %165 = vmatprep.mubr.f32.mxu0 %v599_v3  ;;  %v650_v6 = vshrl.u32 %v42_v5, 7  ;;  %v39_v11 = vld [vmem:[%s686_s0] sm:$0xf]  ;;  %s528_s13 = sshll.u32 %s601_s12, 4  ;;  %vm519_vm3 = vcmp.lt.s32.totalorder %v42_v5, 512  ;;  %s529_s13 = int_to_ptr.vmem [resolvable:$true] %s528_s13 }
  0x12   :  { %242 = vmatprep.mubr.f32.mxu1 %v599_v3  ;;  %91 = vperm.xlu1 %558, %v83_v4   ;;  %v80_v30 = vld [vmem:[%s689_s3] sm:$0xff]  ;;  %s571_s14 = scalar_lea.vmem %s529_s13, 64  ;;  %p576_p6 = scmp.lt.s32.totalorder %s529_s13, %s529_s13 }
  0x13   :  { %v48_v7 = vsub.s32 1, %v650_v6  ;;  %v56_v8 = vsub.s32 3, %v650_v6  ;;  %v44_v9 = vsub.s32 0, %v650_v6  ;;  %v52_v10 = vsub.s32 2, %v650_v6  ;;  %p572_p5 = scmp.ne.s32.totalorder %s529_s13, %s571_s14  ;;  %p577_p7 = scmp.lt.s32.totalorder %s571_s14, %s571_s14 }
  0x15   :  { %86 = vperm.xlu0 %557, %v82_v2   ;;  %v49_v12 = vrot.slane %v39_v11, %v48_v7  ;;  %v57_v13 = vrot.slane %v39_v11, %v56_v8  ;;  %v45_v14 = vrot.slane %v39_v11, %v44_v9  ;;  %v53_v15 = vrot.slane %v39_v11, %v52_v10  ;;  %v291_v2 = vld [vmem:[%s690_s4] sm:$0x3]  ;;  %s37_s4 = sld [smem:[#allocation2]]  ;;  %p578_p8 = por %p577_p7, %p576_p6 }
  0x16   :  { %v75_v21 = vstv %s537_s1 }
  0x17   :  { %p579_p9 = pnand %p578_p8, %p572_p5 }
  0x90   :  { %v65_v16 = vpop.permute.xlu0 %64 }
  0x91   :  { %v68_v17 = vsub.f32 %v49_v12, %v65_v16  ;;  %v70_v18 = vsub.f32 %v57_v13, %v65_v16  ;;  %v67_v19 = vsub.f32 %v45_v14, %v65_v16  ;;  %v69_v20 = vsub.f32 %v53_v15, %v65_v16  ;;  %v92_v41 = vpop.permute.xlu1 %91 }
  0x93   :  { %v72_v22 = vmax.f32 %v68_v17, 0.0  ;;  %v74_v23 = vmax.f32 %v70_v18, 0.0  ;;  %v71_v24 = vmax.f32 %v67_v19, 0.0  ;;  %v73_v25 = vmax.f32 %v69_v20, 0.0 }
  0x94   :  { %v87_v32 = vpop.permute.xlu0 %86 }
  0x95   :  { %v77_v26 = vmin.f32 %v75_v21, %v72_v22  ;;  %v79_v27 = vmin.f32 %v75_v21, %v74_v23  ;;  %v76_v28 = vmin.f32 %v75_v21, %v71_v24  ;;  %v78_v29 = vmin.f32 %v75_v21, %v73_v25 }
  0x97   :  { %101 = vmatprep.subr.mxu0 %v77_v26  ;;  %178 = vmatprep.subr.mxu1 %v79_v27 }
  0x98   :  { %102 = vmatpush1.msra.mxu0 %v76_v28  ;;  %179 = vmatpush1.msra.mxu1 %v78_v29 }
  0x99   :  { %538 = vmatmul.mubr.msk.f32.vlgmr.msra.gmra.mrb[0].mxu0 %vm94_vm0, %v80_v30  ;;  %540 = vmatmul.mubr.msk.f32.vlgmr.msra.gmra.mrb[0].mxu1 %vm94_vm0, %v80_v30 }
  0x9a   :  { %171 = vmatprep.mubr.f32.mxu0 %v599_v3  ;;  %248 = vmatprep.mubr.f32.mxu1 %v599_v3 }
  0x9d   :  { %539 = vmatmul.mubr.msk.f32.gmra.mrb[2].mxu0 %vm94_vm0, %v81_v31  ;;  %541 = vmatmul.mubr.msk.f32.gmra.mrb[2].mxu1 %vm94_vm0, %v81_v31 }
  0x9e   :  { %360 = vmatprep.mubr.f32.mxu0 %v599_v3  ;;  %431 = vmatprep.mubr.f32.mxu1 %v599_v3 }
 0x16c   :  { %v167_v33 = vpop.f32.mrb[0].mxu0  ;;  %v244_v34 = vpop.f32.mrb[0].mxu1 }
 0x16d   :  { %v168_v35 = vadd.f32 %v167_v33, %v87_v32  ;;  %v245_v36 = vadd.f32 %v244_v34, %v87_v32  ;;  %v169_v37 = vpop.f32.mrb[1].mxu0  ;;  %v246_v38 = vpop.f32.mrb[1].mxu1 }
 0x16e   :  { %v170_v39 = vadd.f32 %v169_v37, %v87_v32  ;;  %v247_v40 = vadd.f32 %v246_v38, %v87_v32 }
 0x16f   :  { %v255_v44 = vmul.f32 %v168_v35, %v168_v35  ;;  %v257_v45 = vmul.f32 %v245_v36, %v245_v36 }
 0x170   :  { %v173_v42 = vpop.f32.mrb[2].mxu0  ;;  %v250_v43 = vpop.f32.mrb[2].mxu1  ;;  %v256_v50 = vmul.f32 %v170_v39, %v170_v39  ;;  %v258_v51 = vmul.f32 %v247_v40, %v247_v40 }
 0x171   :  { %v174_v46 = vadd.f32 %v173_v42, %v92_v41  ;;  %v251_v47 = vadd.f32 %v250_v43, %v92_v41  ;;  %v175_v48 = vpop.f32.mrb[3].mxu0  ;;  %v252_v49 = vpop.f32.mrb[3].mxu1 }
 0x172   :  { %v176_v52 = vadd.f32 %v175_v48, %v92_v41  ;;  %v253_v53 = vadd.f32 %v252_v49, %v92_v41 }
 0x173   :  { %v259_v54 = vmul.f32 %v174_v46, %v174_v46  ;;  %v546_v55 = vpack.c.bf16 %v174_v46, %v168_v35  ;;  %v261_v56 = vmul.f32 %v251_v47, %v251_v47  ;;  %v550_v57 = vpack.c.bf16 %v251_v47, %v245_v36 }
 0x174   :  { %v260_v58 = vmul.f32 %v176_v52, %v176_v52  ;;  %v544_v59 = vpack.c.bf16 %v176_v52, %v170_v39  ;;  %v262_v60 = vmul.f32 %v253_v53, %v253_v53  ;;  %v548_v61 = vpack.c.bf16 %v253_v53, %v247_v40 }
 0x175   :  { %v263_v62 = vadd.f32 %v259_v54, %v255_v44  ;;  %v277_v63 = vadd.f32 %v261_v56, %v257_v45 }
 0x176   :  { %v270_v0 = vadd.f32 %v260_v58, %v256_v50  ;;  %v284_v1 = vadd.f32 %v262_v60, %v258_v51  ;;  %545 = vmatprep.subr.bf16.mxu0 %v544_v59  ;;  %549 = vmatprep.subr.bf16.mxu1 %v548_v61  ;;  %v600_v61 = vmov 1966171168  }
 0x177   :  { %547 = vmatpush1.bf16.msra.mxu0 %v546_v55  ;;  %551 = vmatpush1.bf16.msra.mxu1 %v550_v57  ;;  %v264_v3 = vrot.slane %v263_v62, 4  ;;  %v278_v4 = vrot.slane %v277_v63, 4 }
 0x178   :  { %v271_v7 = vrot.slane %v270_v0, 4  ;;  %v285_v8 = vrot.slane %v284_v1, 4 }
 0x179   :  { %v265_v9 = vadd.f32 %v264_v3, %v263_v62  ;;  %v279_v10 = vadd.f32 %v278_v4, %v277_v63  ;;  %v495_v62 = vunpack.c.l.s4 %v600_v61 }
 0x17a   :  { %542 = vmatmul.mubr.msk.f32.vlgmr.msra.gmra.mrb[4].mxu0 %vm292_vm1, %v291_v2  ;;  %543 = vmatmul.mubr.msk.f32.vlgmr.msra.gmra.mrb[4].mxu1 %vm292_vm1, %v291_v2  ;;  %v272_v11 = vadd.f32 %v271_v7, %v270_v0  ;;  %v286_v12 = vadd.f32 %v285_v8, %v284_v1 }
 0x17b   :  { %v266_v13 = vrot.slane %v265_v9, 2  ;;  %v280_v14 = vrot.slane %v279_v10, 2 }
 0x17c   :  { %v273_v15 = vrot.slane %v272_v11, 2  ;;  %v287_v16 = vrot.slane %v286_v12, 2 }
 0x17d   :  { %v267_v19 = vadd.f32 %v266_v13, %v265_v9  ;;  %v281_v24 = vadd.f32 %v280_v14, %v279_v10  ;;  %v483_v13 = vstv %s37_s4  ;;  %v496_v14 = vunpack.c.0.s8 %v495_v62 }
 0x17e   :  { %v274_v27 = vadd.f32 %v273_v15, %v272_v11  ;;  %v288_v28 = vadd.f32 %v287_v16, %v286_v12 }
 0x17f   :  { %v268_v35 = vrot.slane %v267_v19, 1  ;;  %v282_v38 = vrot.slane %v281_v24, 1 }
 0x180   :  { %v275_v41 = vrot.slane %v274_v27, 1  ;;  %v289_v42 = vrot.slane %v288_v28, 1 }
 0x181   :  { %v269_v47 = vadd.f32 %v268_v35, %v267_v19  ;;  %v283_v50 = vadd.f32 %v282_v38, %v281_v24 }
 0x182   :  { %v276_v53 = vadd.f32 %v275_v41, %v274_v27  ;;  %v290_v54 = vadd.f32 %v289_v42, %v288_v28 }
 0x183   :  { %v471_v63 = vmul.f32 8.0, %v269_v47  ;;  %v473_v0 = vmul.f32 8.0, %v283_v50 }
 0x184   :  { %v472_v4 = vmul.f32 8.0, %v276_v53  ;;  %v474_v8 = vmul.f32 8.0, %v290_v54 }
 0x24d   :  { %v362_v17 = vpop.f32.mrb[4].mxu0  ;;  %v433_v18 = vpop.f32.mrb[4].mxu1 }
 0x24e   :  { %v438_v20 = vmul.f32 %v362_v17, %v362_v17  ;;  %v440_v21 = vmul.f32 %v433_v18, %v433_v18  ;;  %v364_v22 = vpop.f32.mrb[5].mxu0  ;;  %v435_v23 = vpop.f32.mrb[5].mxu1 }
 0x24f   :  { %v439_v25 = vmul.f32 %v364_v22, %v364_v22  ;;  %v441_v26 = vmul.f32 %v435_v23, %v435_v23  ;;  %v499_v23 = vsub.s32 %v496_v14, %v650_v6 }
 0x250   :  { %v443_v29 = vsel %vm442_vm2, %v438_v20, 0.0  ;;  %v457_v30 = vsel %vm442_vm2, %v440_v21, 0.0 }
 0x251   :  { %v444_v31 = vrot.slane %v443_v29, 4  ;;  %v458_v32 = vrot.slane %v457_v30, 4  ;;  %v450_v33 = vsel %vm442_vm2, %v439_v25, 0.0  ;;  %v464_v34 = vsel %vm442_vm2, %v441_v26, 0.0 }
 0x252   :  { %v451_v36 = vrot.slane %v450_v33, 4  ;;  %v465_v37 = vrot.slane %v464_v34, 4 }
 0x253   :  { %v445_v39 = vadd.f32 %v444_v31, %v443_v29  ;;  %v459_v40 = vadd.f32 %v458_v32, %v457_v30 }
 0x254   :  { %v452_v43 = vadd.f32 %v451_v36, %v450_v33  ;;  %v466_v44 = vadd.f32 %v465_v37, %v464_v34 }
 0x255   :  { %v446_v45 = vrot.slane %v445_v39, 2  ;;  %v460_v46 = vrot.slane %v459_v40, 2 }
 0x256   :  { %v453_v48 = vrot.slane %v452_v43, 2  ;;  %v467_v49 = vrot.slane %v466_v44, 2 }
 0x257   :  { %v447_v51 = vadd.f32 %v446_v45, %v445_v39  ;;  %v461_v52 = vadd.f32 %v460_v46, %v459_v40 }
 0x258   :  { %v454_v55 = vadd.f32 %v453_v48, %v452_v43  ;;  %v468_v56 = vadd.f32 %v467_v49, %v466_v44 }
 0x259   :  { %v448_v57 = vrot.slane %v447_v51, 1  ;;  %v462_v58 = vrot.slane %v461_v52, 1 }
 0x25a   :  { %v455_v59 = vrot.slane %v454_v55, 1  ;;  %v469_v60 = vrot.slane %v468_v56, 1 }
 0x25b   :  { %v449_v1 = vadd.f32 %v448_v57, %v447_v51  ;;  %v463_v2 = vadd.f32 %v462_v58, %v461_v52 }
 0x25c   :  { %v456_v3 = vadd.f32 %v455_v59, %v454_v55  ;;  %v470_v7 = vadd.f32 %v469_v60, %v468_v56 }
 0x25d   :  { %v475_v9 = vsub.f32 %v471_v63, %v449_v1  ;;  %v477_v10 = vsub.f32 %v473_v0, %v463_v2 }
 0x25e   :  { %v476_v11 = vsub.f32 %v472_v4, %v456_v3  ;;  %v478_v12 = vsub.f32 %v474_v8, %v470_v7 }
 0x25f   :  { %v479_v15 = vmul.f32 0.035714287, %v475_v9  ;;  %v481_v16 = vmul.f32 0.035714287, %v477_v10 }
 0x260   :  { %v480_v17 = vmul.f32 0.035714287, %v476_v11  ;;  %v482_v18 = vmul.f32 0.035714287, %v478_v12 }
 0x261   :  { %v484_v19 = vsub.f32 %v483_v13, %v479_v15  ;;  %v486_v20 = vsub.f32 %v483_v13, %v481_v16 }
 0x262   :  { %v485_v21 = vsub.f32 %v483_v13, %v480_v17  ;;  %v487_v22 = vsub.f32 %v483_v13, %v482_v18 }
 0x264   :  { %v492_v24 = vcombine.low %v484_v19, %v485_v21  ;;  %v493_v25 = vcombine.low %v486_v20, %v487_v22 }
 0x266   :  { %v500_v26 = vrot.slane %v492_v24, %v499_v23  ;;  %v507_v27 = vrot.slane %v493_v25, %v499_v23 }
 0x268   :  { %v508_v28 = vcombine.low %v500_v26, %v507_v27 }
 0x26a   :  { %v515_v29 = vrot.slane %v508_v28, %v499_v23 }
 0x26c   :  { %521 = vst.msk [vmem:[#allocation5] sm:$0xf] %vm519_vm3, %v515_v29 }
 0x26d   :  { %582 = shalt.err (!%p579_p9)
}
 0x26e   :  { %s583_s17 = scalar_lea.hbm %s692_s6, 64 }
 0x26f   :  { %p584_p10 = scmp.ne.s32.totalorder %s692_s6, %s583_s17  ;;  %p587_p11 = scmp.lt.u32.totalorder %s583_s17, %s692_s6 }
 0x271   :  { %p589_p12 = pnand %p587_p11, %p584_p10 }
 0x273   :  { %592 = shalt.err (!%p589_p12)
}
 0x274   :  { %531 = dma.vmem_to_hbm [thread:$0]  %s529_s13, 64, %s692_s6, [#allocation3]  }
 0x275   :  { %595 = dma.done.wait [#allocation3], 64  }
 0x276   :  { %596 = vsyncadd [#allocation3], 4294967232 }
 0x277   :  { %535 = vsyncpa [#allocation3], 1 }
 0x278   :  { %536 = vsyncpa [#allocation4], 1 }

</bundles_post_ra>
